<compile_context>
chip_gen: v5e
topology: v5e:2x2
jax: 0.10.0
libtpu: 0.0.40
codegen_flags: <defaults>
</compile_context>

<pallas_src>
import functools

import jax
import jax.numpy as jnp
import numpy as np
from jax import lax
from jax.experimental import pallas as pl
from jax.experimental.pallas import tpu as pltpu

LN_EPS = 1e-5


# ---------------------------------------------------------------------------
# Pallas kernel: (D,K)x(K,tm) matmul + bias + LayerNorm over D, lane-dense I/O.
# ---------------------------------------------------------------------------
def _patch_embed_kernel(p_ref, w_ref, prm_ref, o_ref):
    # p_ref  : (K, tm) bf16  -- lane-dense patch columns for tm tokens (streamed)
    # w_ref  : (D, K)  bf16  -- conv weight, resident across the grid
    # prm_ref: (D, 3)  f32   -- [conv bias | LN gamma | LN beta], resident
    # o_ref  : (D, tm)       -- lane-dense output (embedding along sublanes)
    y = jnp.dot(w_ref[...], p_ref[...], preferred_element_type=jnp.float32)  # (D, tm)
    y = y + prm_ref[:, 0:1]                       # conv bias (f32)
    mean = jnp.mean(y, axis=0, keepdims=True)     # LayerNorm over embedding dim
    xc = y - mean
    var = jnp.mean(xc * xc, axis=0, keepdims=True)
    y = xc * lax.rsqrt(var + LN_EPS)
    o_ref[...] = (y * prm_ref[:, 1:2] + prm_ref[:, 2:3]).astype(o_ref.dtype)


def _round_up(x, m):
    return -(-x // m) * m


def _pick_tm(n_tokens_per_batch, batch):
    # Prefer big lane-dense tiles (amortize ~0.35us/grid-step), but:
    #   (a) keep >= 4 total grid steps so each v7x TensorCore gets >= 2
    #       pipelined steps (patch DMA stays double-buffered), and
    #   (b) cap token-dim zero padding at 1/8 of the streamed bytes.
    for tm in (2048, 1024, 512, 256, 128):
        n_pad = _round_up(n_tokens_per_batch, tm)
        steps = batch * (n_pad // tm)
        if steps >= 4 and (n_pad - n_tokens_per_batch) * 8 <= n_pad:
            return tm
    return 128


def _proj_layernorm_pallas(patches, w_mat, params, *, tm, out_dtype):
    # patches: (B, K, n_pad) bf16, w_mat: (D, K) bf16, params: (D, 3) f32
    b, k, n_pad = patches.shape
    d = w_mat.shape[0]
    assert n_pad % tm == 0

    grid = (b, n_pad // tm)
    out_itemsize = jnp.dtype(out_dtype).itemsize

    flops = 2 * b * n_pad * k * d
    bytes_accessed = (patches.size * patches.dtype.itemsize
                      + w_mat.size * w_mat.dtype.itemsize
                      + params.size * params.dtype.itemsize
                      + b * n_pad * d * out_itemsize)

    # double-buffered streamed tiles + resident weight/params; generous headroom
    vmem_need = (2 * (k * tm * 2) + 2 * (d * tm * out_itemsize)
                 + d * k * 2 + d * 3 * 4)
    vmem_limit = int(min(64 * 1024 * 1024, max(32 * 1024 * 1024, 2 * vmem_need)))

    return pl.pallas_call(
        _patch_embed_kernel,
        out_shape=jax.ShapeDtypeStruct((b, d, n_pad), out_dtype),
        grid=grid,
        in_specs=[
            pl.BlockSpec((None, k, tm), lambda bi, j: (bi, 0, j)),  # streamed cols
            pl.BlockSpec((d, k), lambda bi, j: (0, 0)),             # weight (resident)
            pl.BlockSpec((d, 3), lambda bi, j: (0, 0)),             # bias/gamma/beta
        ],
        out_specs=pl.BlockSpec((None, d, tm), lambda bi, j: (bi, 0, j)),
        compiler_params=pltpu.CompilerParams(
            dimension_semantics=("parallel", "parallel"),
            vmem_limit_bytes=vmem_limit),
        cost_estimate=pl.CostEstimate(
            flops=flops, transcendentals=0, bytes_accessed=bytes_accessed),
    )(patches, w_mat, params)


# ---------------------------------------------------------------------------
# Glue: im2col for Conv3d(kernel=(3,P,P), stride=(2,P,P), pad=(1,0,0)).
# Casts to bf16 FIRST (pad/slice/stack/transpose are exact) and produces the
# patch matrix batch-major as (B, K, N_b): rows in conv-weight order
# (c, kt, ph, pw), columns in token order (t', h', w').
# ---------------------------------------------------------------------------
def _im2col_temporal(x, patch):
    b, c, t, h, w = x.shape
    p = patch
    assert h % p == 0 and w % p == 0, (
        f"H ({h}) and W ({w}) must be divisible by patch size {p}")
    t_out = (t - 1) // 2 + 1
    h_out, w_out = h // p, w // p

    x_bf = x.astype(jnp.bfloat16)                          # cast early: halves glue HBM traffic
    x_pad = jnp.pad(x_bf, ((0, 0), (0, 0), (1, 1), (0, 0), (0, 0)))
    # three temporal taps (strided slices, no gather): padded frame = 2*t' + kt
    limit0 = 2 * (t_out - 1) + 1
    taps = [lax.slice_in_dim(x_pad, kt, kt + limit0, stride=2, axis=2)
            for kt in range(3)]
    xw = jnp.stack(taps, axis=3)                           # (B, C, T', 3, H, W)
    xw = xw.reshape(b, c, t_out, 3, h_out, p, w_out, p)
    # -> (B, C, 3, P, P, T', H', W'): weight order along rows, token order along cols
    xw = jnp.transpose(xw, (0, 1, 3, 5, 7, 2, 4, 6))
    k = c * 3 * p * p
    n_b = t_out * h_out * w_out
    patches = xw.reshape(b, k, n_b)                        # (B, K, N_b) bf16
    return patches, (t_out, h_out, w_out, n_b, k)


def special_patch_embed_forward(x, conv_w, conv_b, ln_g, ln_b, *, patch,
                                out_dtype=jnp.float32):
    """x: (B, C, T, H, W).  conv_w: (D, C, 3, P, P).  Returns
    (B, D, T', H', W') with T' = (T - 1)//2 + 1, H' = H//P, W' = W//P."""
    b = x.shape[0]
    d = conv_w.shape[0]

    patches, (t_out, h_out, w_out, n_b, k) = _im2col_temporal(x, patch)
    w_mat = conv_w.reshape(d, k).astype(jnp.bfloat16)                      # (D, K)
    params = jnp.stack([conv_b, ln_g, ln_b], axis=1).astype(jnp.float32)   # (D, 3)

    tm = _pick_tm(n_b, b)
    n_pad = _round_up(n_b, tm)
    if n_pad != n_b:
        # zero columns hit LN with var=0 -> large-but-finite values, sliced off below
        patches = jnp.pad(patches, ((0, 0), (0, 0), (0, n_pad - n_b)))

    y = _proj_layernorm_pallas(patches, w_mat, params, tm=tm,
                               out_dtype=out_dtype)         # (B, D, n_pad)

    if n_pad != n_b:
        y = y[:, :, :n_b]
    # batch-major output: no transpose needed, just a reshape of trailing dims
    return y.reshape(b, d, t_out, h_out, w_out)


# ---------------------------------------------------------------------------
# Pure-JAX reference (the PyTorch module semantics).
# ---------------------------------------------------------------------------
def _reference(x, conv_w, conv_b, ln_g, ln_b, *, patch):
    p = patch
    y = lax.conv_general_dilated(
        x, conv_w,
        window_strides=(2, p, p),
        padding=((1, 1), (0, 0), (0, 0)),
        dimension_numbers=("NCDHW", "OIDHW", "NCDHW"),
    ) + conv_b[None, :, None, None, None]
    b, d, t, h, w = y.shape
    y = y.reshape(b, d, t * h * w).transpose(0, 2, 1)          # (B, N, D)
    mean = jnp.mean(y, axis=-1, keepdims=True)
    var = jnp.mean((y - mean) ** 2, axis=-1, keepdims=True)
    y = (y - mean) * lax.rsqrt(var + LN_EPS) * ln_g + ln_b
    y = y.reshape(b, t, h, w, d)
    return jnp.transpose(y, (0, 4, 1, 2, 3))


if __name__ == "__main__":
    # small, self-consistent shapes
    B, C_in, T, H, W = 2, 4, 8, 32, 32
    P = 4            # patch size
    D = 32           # embed dim

    key = jax.random.PRNGKey(0)
    k_x, k_w, k_b, k_g, k_beta = jax.random.split(key, 5)

    x = jax.random.normal(k_x, (B, C_in, T, H, W), dtype=jnp.float32)
    conv_w = jax.random.normal(k_w, (D, C_in, 3, P, P), dtype=jnp.float32) * 0.05
    conv_b = jax.random.normal(k_b, (D,), dtype=jnp.float32) * 0.05
    ln_g = 1.0 + 0.1 * jax.random.normal(k_g, (D,), dtype=jnp.float32)
    ln_b = 0.1 * jax.random.normal(k_beta, (D,), dtype=jnp.float32)

    fwd = functools.partial(special_patch_embed_forward, patch=P)
    out = jax.block_until_ready(fwd(x, conv_w, conv_b, ln_g, ln_b))
    assert out.shape == (B, D, (T - 1) // 2 + 1, H // P, W // P)

    # 1) tight structural check: reference fed the same bf16-rounded operands
    x_bf = x.astype(jnp.bfloat16).astype(jnp.float32)
    w_bf = conv_w.astype(jnp.bfloat16).astype(jnp.float32)
    ref_matched = _reference(x_bf, w_bf, conv_b, ln_g, ln_b, patch=P)
    np.testing.assert_allclose(np.asarray(out), np.asarray(ref_matched),
                               rtol=1e-3, atol=1e-3)

    # 2) loose semantic check vs the full-f32 module (bf16 matmul operands,
    #    f32 accumulation -> small bounded error)
    ref_f32 = _reference(x, conv_w, conv_b, ln_g, ln_b, patch=P)
    np.testing.assert_allclose(np.asarray(out), np.asarray(ref_f32),
                               rtol=5e-2, atol=5e-2)

    # 3) bf16-output path (for bf16 downstream consumers): same math, rounded store
    out_bf16 = jax.block_until_ready(
        special_patch_embed_forward(x, conv_w, conv_b, ln_g, ln_b,
                                    patch=P, out_dtype=jnp.bfloat16))
    np.testing.assert_allclose(np.asarray(out_bf16.astype(jnp.float32)),
                               np.asarray(out), rtol=3e-2, atol=3e-2)

    print("KERNEL_OK")
</pallas_src>

<mosaic_0001>
module attributes {stable_mosaic.version = 11 : i64} {
  func.func @_patch_embed_kernel(%arg0: i32, %arg1: i32, %arg2: memref<1x192x128xbf16, #tpu.memory_space<vmem>>, %arg3: memref<32x192xbf16, #tpu.memory_space<vmem>>, %arg4: memref<32x3xf32, #tpu.memory_space<vmem>>, %arg5: memref<1x32x128xf32, #tpu.memory_space<vmem>>) attributes {dimension_semantics = [#tpu.dimension_semantics<parallel>, #tpu.dimension_semantics<parallel>], iteration_bounds = array<i64: 2, 2>, scalar_prefetch = 0 : i64, scratch_operands = 0 : i64, tpu.core_type = #tpu.core_type<tc>, window_params = [{transform_indices = @transform_0, window_bounds = array<i64: 1, 192, 128>}, {pipeline_mode = #tpu.pipeline_mode<synchronous>, transform_indices = @transform_1, window_bounds = array<i64: 32, 192>}, {pipeline_mode = #tpu.pipeline_mode<synchronous>, transform_indices = @transform_2, window_bounds = array<i64: 32, 3>}, {transform_indices = @transform_3, window_bounds = array<i64: 1, 32, 128>}]} {
    %c0 = arith.constant 0 : index
    %c0_0 = arith.constant 0 : index
    %0 = vector.load %arg3[%c0, %c0_0] : memref<32x192xbf16, #tpu.memory_space<vmem>>, vector<32x192xbf16>
    %c0_1 = arith.constant 0 : index
    %c0_2 = arith.constant 0 : index
    %c0_3 = arith.constant 0 : index
    %1 = vector.load %arg2[%c0_1, %c0_2, %c0_3] : memref<1x192x128xbf16, #tpu.memory_space<vmem>>, vector<1x192x128xbf16>
    %2 = vector.shape_cast %1 : vector<1x192x128xbf16> to vector<192x128xbf16>
    %cst = arith.constant dense<0.000000e+00> : vector<32x128xf32>
    %3 = tpu.matmul %0, %2, %cst {dimension_numbers = #tpu.dot_dimension_numbers<[1], [0], [0], [1], [0, 0, 1, 1], [], []>} : vector<32x192xbf16>, vector<192x128xbf16>, vector<32x128xf32> -> vector<32x128xf32>
    %c0_4 = arith.constant 0 : index
    %c0_5 = arith.constant 0 : index
    %4 = vector.load %arg4[%c0_4, %c0_5] : memref<32x3xf32, #tpu.memory_space<vmem>>, vector<32x1xf32>
    %5 = vector.broadcast %4 : vector<32x1xf32> to vector<32x128xf32>
    %6 = arith.addf %3, %5 : vector<32x128xf32>
    %cst_6 = arith.constant dense<0.000000e+00> : vector<128xf32>
    %7 = vector.multi_reduction <add>, %6, %cst_6 [0] : vector<32x128xf32> to vector<128xf32>
    %8 = vector.shape_cast %7 : vector<128xf32> to vector<1x128xf32>
    %cst_7 = arith.constant 3.200000e+01 : f32
    %9 = vector.broadcast %cst_7 : f32 to vector<1x128xf32>
    %10 = arith.divf %8, %9 : vector<1x128xf32>
    %11 = vector.broadcast %10 : vector<1x128xf32> to vector<32x128xf32>
    %12 = arith.subf %6, %11 : vector<32x128xf32>
    %13 = arith.mulf %12, %12 : vector<32x128xf32>
    %cst_8 = arith.constant dense<0.000000e+00> : vector<128xf32>
    %14 = vector.multi_reduction <add>, %13, %cst_8 [0] : vector<32x128xf32> to vector<128xf32>
    %15 = vector.shape_cast %14 : vector<128xf32> to vector<1x128xf32>
    %cst_9 = arith.constant 3.200000e+01 : f32
    %16 = vector.broadcast %cst_9 : f32 to vector<1x128xf32>
    %17 = arith.divf %15, %16 : vector<1x128xf32>
    %cst_10 = arith.constant 9.99999974E-6 : f32
    %18 = vector.broadcast %cst_10 : f32 to vector<1x128xf32>
    %19 = arith.addf %17, %18 : vector<1x128xf32>
    %20 = math.rsqrt %19 : vector<1x128xf32>
    %21 = vector.broadcast %20 : vector<1x128xf32> to vector<32x128xf32>
    %22 = arith.mulf %12, %21 : vector<32x128xf32>
    %c0_11 = arith.constant 0 : index
    %c1 = arith.constant 1 : index
    %23 = vector.load %arg4[%c0_11, %c1] : memref<32x3xf32, #tpu.memory_space<vmem>>, vector<32x1xf32>
    %24 = vector.broadcast %23 : vector<32x1xf32> to vector<32x128xf32>
    %25 = arith.mulf %22, %24 : vector<32x128xf32>
    %c0_12 = arith.constant 0 : index
    %c2 = arith.constant 2 : index
    %26 = vector.load %arg4[%c0_12, %c2] : memref<32x3xf32, #tpu.memory_space<vmem>>, vector<32x1xf32>
    %27 = vector.broadcast %26 : vector<32x1xf32> to vector<32x128xf32>
    %28 = arith.addf %25, %27 : vector<32x128xf32>
    %c0_13 = arith.constant 0 : index
    %c0_14 = arith.constant 0 : index
    %c0_15 = arith.constant 0 : index
    %29 = vector.load %arg5[%c0_13, %c0_14, %c0_15] : memref<1x32x128xf32, #tpu.memory_space<vmem>>, vector<1x32x128xf32>
    %30 = vector.shape_cast %29 : vector<1x32x128xf32> to vector<32x128xf32>
    %31 = vector.shape_cast %28 : vector<32x128xf32> to vector<1x32x128xf32>
    tpu.vector_store %arg5[%c0_13, %c0_14, %c0_15], %31 {strides = array<i32>} : memref<1x32x128xf32, #tpu.memory_space<vmem>>, vector<1x32x128xf32>,
    return
  }
  func.func @transform_0(%arg0: i32, %arg1: i32) -> (i32, i32, i32) {
    %c0_i32 = arith.constant 0 : i32
    %c0_i32_0 = arith.constant 0 : i32
    return %arg0, %c0_i32, %arg1 : i32, i32, i32
  }
  func.func @transform_1(%arg0: i32, %arg1: i32) -> (i32, i32) {
    %c0_i32 = arith.constant 0 : i32
    %c0_i32_0 = arith.constant 0 : i32
    %c0_i32_1 = arith.constant 0 : i32
    return %c0_i32, %c0_i32_0 : i32, i32
  }
  func.func @transform_2(%arg0: i32, %arg1: i32) -> (i32, i32) {
    %c0_i32 = arith.constant 0 : i32
    %c0_i32_0 = arith.constant 0 : i32
    %c0_i32_1 = arith.constant 0 : i32
    return %c0_i32, %c0_i32_0 : i32, i32
  }
  func.func @transform_3(%arg0: i32, %arg1: i32) -> (i32, i32, i32) {
    %c0_i32 = arith.constant 0 : i32
    %c0_i32_0 = arith.constant 0 : i32
    return %arg0, %c0_i32, %arg1 : i32, i32, i32
  }
}

</mosaic_0001>

<bundles_post_ra>
// kernel: tpu_custom_call.1
= control target key start
LH: loop header
LB: loop body
LE: loop exit
PB: predicated region body
PF: predicated region fallthrough
CT: control target
= control target key end

     0   :  { %8 = vsyncpa [#allocation3], 0  ;;  %s1155_s0 = inlined_call_operand.hbm [shape: bf16[2,192,256], index: 0, kind: input, shape index: {}]   ;;  %s1156_s1 = inlined_call_operand.vmem [shape: bf16[32,192], index: 1, kind: input, shape index: {}]   ;;  %s1157_s2 = inlined_call_operand.vmem [shape: f32[32,3], index: 2, kind: input, shape index: {}]   ;;  %s1158_s3 = inlined_call_operand.hbm [shape: f32[2,32,256], index: 3, kind: output, shape index: {}]  }
   0x1   :  { %10 = vsyncpa [#allocation3 + $0x1], 0 }
   0x2   :  { %11 = vsyncpa [#allocation4], 0 }
   0x3   :  { %13 = vsyncpa [#allocation4 + $0x1], 0  ;;  %s960_s12 = smov 0   ;;  %s962_s13 = smov 0  }
   0x4   :  { %s964_s14 = smov 0   ;;  %s966_s15 = smov 0  }
   0x5   :  { %s968_s16 = smov 0   ;;  %s970_s17 = smov 0  }
   0x6   :  { %s972_s18 = smov 0   ;;  %s974_s19 = smov 0  }
   0x7 LB: > { %s595_s20 = sadd.s32 4294967295, %s928_s19   ;;  %s596_s21 = sadd.s32 4294967294, %s928_s19   ;;  %s928_s19 = sphi %s974_s19, %s19_s19   ;;  %s924_s18 = sphi %s972_s18, %s1177_s18   ;;  %s920_s17 = sphi %s970_s17, %s1176_s17   ;;  %s916_s16 = sphi %s968_s16, %s1175_s16   ;;  %s912_s15 = sphi %s966_s15, %s1174_s15   ;;  %s908_s14 = sphi %s964_s14, %s1173_s14   ;;  %s904_s13 = sphi %s962_s13, %s1172_s13   ;;  %s900_s12 = sphi %s960_s12, %s1171_s12  }
   0x8   : > { %s28_s22 = sadd.s32 1, %s920_s17  ;;  %s31_s23 = sadd.s32 1, %s924_s18 }
   0x9   : > { %p29_p0 = scmp.ge.s32.totalorder %s28_s22, 2  ;;  %s40_s24 = sadd.s32 1, %s908_s14 }
   0xa   : > { %p47_p1 = scmp.ne.s32.totalorder %s908_s14, %s904_s13  ;;  %p48_p2 = scmp.eq.s32.totalorder %s928_s19, 0 }
   0xb   : > { %s1179_s22 = smov (%p29_p0, %s28_s22), 0  ;;  %s1181_s23 = smov (!%p29_p0, %s31_s23), %s924_s18 }
   0xc   : > { %1161 = sst [smem:[#allocation8_spill]] %s1179_s22  ;;  %s36_s25 = ssub.s32 %s920_s17, %s1179_s22 }
   0xd   : > { %p1013_p3 = por %p48_p2, %p47_p1  ;;  %p33_p4 = scmp.ge.s32.totalorder %s1181_s23, 2 }
   0xe   : > { %p53_p5 = scmp.ne.s32.totalorder %s904_s13, %s900_s12  ;;  %p54_p6 = scmp.eq.s32.totalorder %s595_s20, 0 }
   0xf   : > { %p121_p7 = scmp.eq.s32.totalorder %s595_s20, 3  ;;  %s1183_s23 = smov (%p33_p4, %s1181_s23), 0 }
  0x10   : > { %1163 = sst [smem:[#allocation9_spill]] %s1183_s23  ;;  %p1021_p8 = por %p54_p6, %p53_p5 }
  0x11   : > { %p1025_p9 = por %p121_p7, %p47_p1  ;;  %s35_s29 = ssub.s32 %s924_s18, %s1183_s23 }
  0x12   : > { %p127_p10 = scmp.eq.s32.totalorder %s596_s21, 3  ;;  %s37_s30 = sor.u32 %s36_s25, %s35_s29 }
  0x13   : > { %p38_p11 = scmp.eq.s32.totalorder %s37_s30, 0  ;;  %p712_p13 = scmp.lt.s32.totalorder %s928_s19, 4 }
  0x14   : > { %p1031_p12 = por %p127_p10, %p53_p5  ;;  %s153_s5 = sand.u32 1, %s908_s14  }
  0x15   : > { %s1038_s6 = scalar_select %p38_p11, %s908_s14, %s40_s24  }
  0x16   : > { %s697_s7 = smul.u32 96, %s153_s5  ;;  %p705_p0 = pnand %p712_p13, %p1013_p3 }
  0x17   : > { %1167 = sst [smem:[#allocation10_spill]] %s1038_s6  ;;  %s698_s8 = smul.u32 48, %s924_s18 }
  0x18   : > { %s157_s10 = scalar_lea.vmem [#allocation2], %s697_s7  ;;  %s154_s23 = scalar_lea.sflag [#allocation3], %s153_s5 }
  0x19   : > { %s161_s9 = sadd.s32 %s920_s17, %s698_s8  ;;  %s166_s11 = sshll.u32 %s157_s10, 4  ;;  %s167_s11 = int_to_ptr.vmem [resolvable:$true] %s166_s11 }
  0x1a   : > { %s599_s20 = sshll.u32 %s161_s9, 2  ;;  %s930_s24 = smov 128  }
  0x1b   : > { %s163_s29 = scalar_lea.hbm %s1155_s0, %s599_s20  ;;  %s931_s22 = smov 64  }
  0x1c   : > { %s164_s30 = sshll.u32 %s163_s29, 4  ;;  %s932_s6 = smov 4   ;;  %s165_s30 = int_to_ptr.hbm [resolvable:$true] %s164_s30 }
  0x1d   : > { %707 = dma.hbm_to_vmem [thread:$0]  (!%p705_p0), %s165_s30, 1536, %s167_s11, %s154_s23, %s930_s24, %s931_s22, %s932_s6  }
  0x1e   : > { %p600_p1 = scmp.ge.s32.totalorder %s928_s19, 1  ;;  %p174_p2 = scmp.lt.s32.totalorder %s928_s19, 5 }
  0x20   : > { %p175_p4 = pnand %p600_p1, %p174_p2 }
  0x21   : > { %s1050_s26 = sand.u32 (!%p175_p4), 1, %s904_s13  }
  0x22   : > { %178 = sbr.rel (%p175_p4) target bundleno = 291 (0x123), region = 32  ;;  %s181_s8 = scalar_lea.sflag (!%p175_p4), [#allocation3], %s1050_s26 }
  0x23   : > { %s699_s7 = smul.u32 (!%p175_p4), 96, %s1050_s26 }
  0x25   : > { %s1054_s9 = scalar_lea.vmem (!%p175_p4), [#allocation2], %s699_s7 }
  0x27   : > { %891 = dma.done.wait (%p1021_p8), %s181_s8, 1536  }
  0x28   : > { %893 = vsyncadd (%p1021_p8), %s181_s8, 4294965760  ;;  %v684_v0 = vld [vmem:[%s1054_s9 + $0x38] sm:$0xff]  ;;  %v683_v2 = vld [vmem:[%s1054_s9 + $0x30] sm:$0xff]  ;;  %v933_v4 = vmov 0   ;;  %v934_v5 = vmov 1   ;;  %vm351_vm0 = vcmask 523264  }
  0x29   : > { %v688_v1 = vld [vmem:[%s1054_s9 + $0x58] sm:$0xff]  ;;  %358 = vmatpush.bf16.msra.mxu0 %v684_v0  ;;  %689 = vmatpush.bf16.msra.mxu2 %v684_v0  ;;  %v687_v3 = vld [vmem:[%s1054_s9 + $0x50] sm:$0xff]  ;;  %v682_v6 = vld [vmem:[%s1054_s9 + $0x28] sm:$0xff]  ;;  %v935_v21 = vmov 2   ;;  %v936_v36 = vmov 32.0   ;;  %s669_s21 = sshll.u32 %s916_s16, 3 }
  0x2a   : > { %381 = vmatpush.bf16.msra.mxu1 %v688_v1  ;;  %788 = vset.pattern.permute.xlu0 %v933_v4  ;;  %v237_v7 = vld [vmem:[%s1157_s2] sm:$0xff]  ;;  %v686_v8 = vld [vmem:[%s1054_s9 + $0x48] sm:$0xff]  ;;  %v239_v9 = vld [vmem:[%s1157_s2 + $0x10] sm:$0xff]  ;;  %796 = vrcp.f32 %v936_v36  ;;  %s501_s25 = sadd.s32 %s912_s15, %s669_s21  ;;  %s601_s29 = sshll.u32 %s1050_s26, 5 }
  0x2b   : > { %789 = vset.pattern.permute.xlu1 %v933_v4  ;;  %790 = vset.pattern.permute.xlu2 %v934_v5  ;;  %v681_v10 = vld [vmem:[%s1054_s9 + $0x20] sm:$0xff]  ;;  %v606_v13 = vld [vmem:[%s1156_s1 + $0x8] sm:$0xf0]  ;;  %v240_v15 = vld [vmem:[%s1157_s2 + $0x18] sm:$0xff]  ;;  %s670_s30 = sshll.u32 %s501_s25, 3  ;;  %s207_s15 = scalar_lea.vmem [#allocation5], %s601_s29 }
  0x2c   : > { %243 = vperm.xlu0 %788, %v237_v7   ;;  %253 = vperm.xlu1 %789, %v239_v9   ;;  %v685_v11 = vld [vmem:[%s1054_s9 + $0x40] sm:$0xff]  ;;  %v238_v14 = vld [vmem:[%s1157_s2 + $0x8] sm:$0xff]  ;;  %v680_v17 = vld [vmem:[%s1054_s9 + $0x18] sm:$0xff]  ;;  %s503_s16 = scalar_lea.hbm %s1158_s3, %s670_s30  ;;  %s504_s8 = sshll.u32 %s207_s15, 4  ;;  %s505_s8 = int_to_ptr.vmem [resolvable:$true] %s504_s8 }
  0x2d   : > { %359 = vmatpush.bf16.msra.mxu0 %v683_v2  ;;  %690 = vmatpush.bf16.msra.mxu2 %v683_v2  ;;  %v673_v12 = vld [vmem:[%s1156_s1 + $0x4] sm:$0xf]  ;;  %v679_v18 = vld [vmem:[%s1054_s9 + $0x10] sm:$0xff]  ;;  %v678_v19 = vld [vmem:[%s1054_s9 + $0x8] sm:$0xff]  ;;  %s506_s22 = sshll.u32 %s503_s16, 4  ;;  %s491_s23 = scalar_lea.sflag [#allocation4], %s1050_s26  ;;  %s507_s22 = int_to_ptr.hbm [resolvable:$true] %s506_s22 }
  0x2e   : > { %382 = vmatpush.bf16.msra.mxu1 %v687_v3  ;;  %447 = vperm.xlu2 %790, %v237_v7   ;;  %v609_v16 = vor.u32 %v673_v12, %v606_v13  ;;  %v677_v20 = vld [vmem:[%s1054_s9] sm:$0xff]  ;;  %v674_v23 = vld [vmem:[%s1156_s1 + $0x4] sm:$0xf0]  ;;  %v612_v24 = vld [vmem:[%s1156_s1 + $0x10] sm:$0xf]  ;;  %s844_s27 = sshra.s32 %s507_s22, 4  ;;  %s845_s27 = int_to_ptr.hbm [resolvable:$true] %s844_s27 }
  0x2f   : > { %v604_v22 = vld [vmem:[%s1156_s1] sm:$0xf]  ;;  %v676_v25 = vld [vmem:[%s1156_s1 + $0x14] sm:$0xf0]  ;;  %v675_v26 = vld [vmem:[%s1156_s1 + $0x14] sm:$0xf]  ;;  %p851_p7 = scmp.lt.s32.totalorder %s845_s27, %s1158_s3 }
  0x30   : > { %v614_v27 = vld [vmem:[%s1156_s1 + $0x18] sm:$0xf0]  ;;  %v605_v28 = vor.u32 %v674_v23, %v604_v22  ;;  %v613_v29 = vor.u32 %v676_v25, %v612_v24  ;;  %v797_v44 = vpop.eup %796  ;;  %s846_s5 = scalar_lea.hbm %s845_s27, 32  ;;  %s850_s10 = scalar_lea.hbm %s1158_s3, 128 }
  0x31   : > { %360 = vmatpush.bf16.msra.mxu0 %v682_v6  ;;  %691 = vmatpush.bf16.msra.mxu2 %v682_v6  ;;  %v617_v30 = vor.u32 %v675_v26, %v614_v27  ;;  %v406_v50 = vmul.f32 32.0, %v797_v44  ;;  %vm410_vm1 = vweird.f32 %v797_v44  ;;  %p847_p3 = scmp.ne.s32.totalorder %s845_s27, %s846_s5  ;;  %p852_p8 = scmp.lt.s32.totalorder %s850_s10, %s846_s5 }
  0x32   : > { %383 = vmatpush.bf16.msra.mxu1 %v686_v8 }
  0x33   : > { %v407_v56 = vsub.f32 1.0, %v406_v50  ;;  %p848_p5 = pnand %p847_p3, %p1025_p9  ;;  %p853_p10 = por %p852_p8, %p851_p7 }
  0x34   : > { %248 = vperm.xlu0 %788, %v238_v14   ;;  %258 = vperm.xlu1 %789, %v240_v15  }
  0x35   : > { %361 = vmatpush.bf16.msra.mxu0 %v681_v10  ;;  %692 = vmatpush.bf16.msra.mxu2 %v681_v10  ;;  %v408_v59 = vmul.f32 %v797_v44, %v407_v56  ;;  %p849_p6 = pneg %p848_p5 }
  0x36   : > { %384 = vmatpush.bf16.msra.mxu1 %v685_v11  ;;  %451 = vperm.xlu2 %790, %v238_v14  }
  0x37   : > { %v409_v62 = vadd.f32 %v797_v44, %v408_v59  ;;  %p854_p11 = pnand %p853_p10, %p849_p6 }
  0x39   : > { %666 = vmatmul.msk.bf16.vlgmr.msra.gmra.mxu1 %vm351_vm0, %v609_v16  ;;  %362 = vmatpush.bf16.msra.mxu0 %v680_v17  ;;  %v411_v1 = vsel %vm410_vm1, %v797_v44, %v409_v62 }
  0x3a   : > { %693 = vmatpush.bf16.msra.mxu2 %v680_v17 }
  0x3c   : > { %791 = vset.pattern.permute.xlu0 %v934_v5  ;;  %792 = vset.pattern.permute.xlu1 %v934_v5 }
  0x3d   : > { %363 = vmatpush.bf16.msra.mxu0 %v679_v18  ;;  %455 = vperm.xlu0 %791, %v239_v9  }
  0x3e   : > { %694 = vmatpush.bf16.msra.mxu2 %v679_v18  ;;  %459 = vperm.xlu1 %792, %v240_v15  }
  0x3f   : > { %793 = vset.pattern.permute.xlu2 %v935_v21 }
  0x40   : > { %467 = vperm.xlu2 %793, %v237_v7  }
  0x41   : > { %364 = vmatpush.bf16.msra.mxu0 %v678_v19 }
  0x42   : > { %695 = vmatpush.bf16.msra.mxu2 %v678_v19 }
  0x45   : > { %365 = vmatpush.bf16.msra.mxu0 %v677_v20  ;;  %795 = vset.pattern.permute.xlu0 %v935_v21 }
  0x46   : > { %696 = vmatpush.bf16.msra.mxu2 %v677_v20  ;;  %794 = vset.pattern.permute.xlu1 %v935_v21 }
  0x47   : > { %471 = vperm.xlu1 %794, %v238_v14   ;;  %479 = vperm.xlu0 %795, %v240_v15  }
  0x48   : > { %366 = vmatmul.bf16.vlgmr.msra.gmra.mxu0 %v605_v28  ;;  %475 = vperm.xlu2 %793, %v239_v9  }
  0x49   : > { %371 = vmatmul.bf16.vlgmr.msra.gmra.mxu2 %v613_v29  ;;  %667 = vmatmul.msk.bf16.gmra.mxu1 %vm351_vm0, %v617_v30 }
  0x88   : > { %v448_v19 = vpop.permute.xlu2 %447 }
  0x90   : > { %v452_v24 = vpop.permute.xlu2 %451 }
  0x9e   : > { %v244_v33 = vpop.permute.xlu0 %243  ;;  %v254_v35 = vpop.permute.xlu1 %253 }
  0xa6   : > { %v249_v40 = vpop.permute.xlu0 %248  ;;  %v259_v48 = vpop.permute.xlu1 %258 }
  0xaf   : > { %v456_v29 = vpop.permute.xlu0 %455 }
  0xb0   : > { %v460_v28 = vpop.permute.xlu1 %459 }
  0xb6   : > { %v386_v31 = vpop.f32.mrf.mxu1 }
  0xb9   : > { %v480_v44 = vpop.permute.xlu0 %479 }
  0xbe   : > { %v388_v32 = vpop.f32.mrf.mxu1 }
  0xc5   : > { %v367_v34 = vpop.f32.mrf.mxu0 }
  0xc6   : > { %v391_v37 = vpop.f32.mrf.mxu1  ;;  %v368_v39 = vadd.f32 %v367_v34, %v244_v33 }
  0xc8   : > { %v387_v45 = vadd.f32 %v386_v31, %v368_v39  ;;  %v468_v31 = vpop.permute.xlu2 %467  ;;  %v472_v39 = vpop.permute.xlu1 %471 }
  0xcc   : > { %v372_v38 = vpop.f32.mrf.mxu2 }
  0xcd   : > { %v369_v41 = vpop.f32.mrf.mxu0  ;;  %v373_v46 = vadd.f32 %v372_v38, %v254_v35 }
  0xce   : > { %v370_v42 = vadd.f32 %v369_v41, %v249_v40  ;;  %v393_v53 = vpop.f32.mrf.mxu1 }
  0xcf   : > { %v392_v51 = vadd.f32 %v391_v37, %v373_v46 }
  0xd0   : > { %v389_v43 = vadd.f32 %v388_v32, %v370_v42 }
  0xd2   : > { %v396_v47 = vadd.f32 %v389_v43, %v387_v45 }
  0xd4   : > { %v374_v49 = vpop.f32.mrf.mxu2  ;;  %v397_v55 = vadd.f32 %v396_v47, %v392_v51 }
  0xd5   : > { %v375_v52 = vadd.f32 %v374_v49, %v259_v48 }
  0xd7   : > { %v394_v54 = vadd.f32 %v393_v53, %v375_v52 }
  0xd9   : > { %v398_v57 = vadd.f32 %v397_v55, %v394_v54 }
  0xdb   : > { %v399_v58 = vrot.slane %v398_v57, 4 }
  0xdd   : > { %v400_v60 = vadd.f32 %v399_v58, %v398_v57 }
  0xdf   : > { %v401_v61 = vrot.slane %v400_v60, 2 }
  0xe1   : > { %v402_v63 = vadd.f32 %v401_v61, %v400_v60 }
  0xe3   : > { %v403_v0 = vrot.slane %v402_v63, 1 }
  0xe5   : > { %v404_v2 = vadd.f32 %v403_v0, %v402_v63 }
  0xe7   : > { %v412_v3 = vmul.f32 %v411_v1, %v404_v2 }
  0xe9   : > { %v414_v4 = vsub.f32 %v389_v43, %v412_v3  ;;  %v415_v5 = vsub.f32 %v392_v51, %v412_v3  ;;  %v413_v6 = vsub.f32 %v387_v45, %v412_v3  ;;  %v416_v7 = vsub.f32 %v394_v54, %v412_v3  ;;  %v476_v45 = vpop.permute.xlu2 %475 }
  0xeb   : > { %v417_v8 = vmul.f32 %v413_v6, %v413_v6  ;;  %v418_v9 = vmul.f32 %v414_v4, %v414_v4  ;;  %v419_v10 = vmul.f32 %v415_v5, %v415_v5  ;;  %v420_v12 = vmul.f32 %v416_v7, %v416_v7 }
  0xed   : > { %v421_v11 = vadd.f32 %v418_v9, %v417_v8 }
  0xef   : > { %v422_v13 = vadd.f32 %v421_v11, %v419_v10 }
  0xf1   : > { %v423_v14 = vadd.f32 %v422_v13, %v420_v12 }
  0xf3   : > { %v424_v15 = vrot.slane %v423_v14, 4 }
  0xf5   : > { %v425_v16 = vadd.f32 %v424_v15, %v423_v14 }
  0xf7   : > { %v426_v17 = vrot.slane %v425_v16, 2 }
  0xf9   : > { %v427_v18 = vadd.f32 %v426_v17, %v425_v16 }
  0xfb   : > { %v428_v20 = vrot.slane %v427_v18, 1 }
  0xfd   : > { %v429_v21 = vadd.f32 %v428_v20, %v427_v18 }
  0xff   : > { %v430_v22 = vmul.f32 %v429_v21, %v411_v1 }
 0x101   : > { %v431_v23 = vadd.f32 1e-05, %v430_v22 }
 0x103   : > { %798 = vrsqrt.f32 %v431_v23  ;;  %vm438_vm3 = vweird.f32 %v431_v23 }
 0x109   : > { %v799_v25 = vpop.eup %798 }
 0x10a   : > { %v433_v26 = vmul.f32 %v799_v25, %v431_v23  ;;  %vm439_vm2 = vweird.f32 %v799_v25 }
 0x10b   : > { %vm440_vm4 = vmor %vm438_vm3, %vm439_vm2 }
 0x10c   : > { %v434_v27 = vmul.f32 %v799_v25, %v433_v26 }
 0x10e   : > { %v435_v30 = vmul.f32 0.5, %v434_v27 }
 0x110   : > { %v436_v32 = vsub.f32 1.5, %v435_v30 }
 0x112   : > { %v437_v33 = vmul.f32 %v799_v25, %v436_v32 }
 0x114   : > { %v441_v34 = vsel %vm440_vm4, %v799_v25, %v437_v33 }
 0x115   : > { %v442_v35 = vmul.f32 %v441_v34, %v413_v6  ;;  %v443_v36 = vmul.f32 %v441_v34, %v414_v4  ;;  %v445_v37 = vmul.f32 %v441_v34, %v416_v7  ;;  %v444_v38 = vmul.f32 %v441_v34, %v415_v5 }
 0x117   : > { %v462_v40 = vmul.f32 %v448_v19, %v442_v35  ;;  %v463_v41 = vmul.f32 %v452_v24, %v443_v36  ;;  %v465_v42 = vmul.f32 %v460_v28, %v445_v37  ;;  %v464_v43 = vmul.f32 %v456_v29, %v444_v38 }
 0x119   : > { %v482_v46 = vadd.f32 %v468_v31, %v462_v40  ;;  %v484_v47 = vadd.f32 %v476_v45, %v464_v43  ;;  %v483_v48 = vadd.f32 %v472_v39, %v463_v41  ;;  %v485_v49 = vadd.f32 %v480_v44, %v465_v42 }
 0x11b   : > { %486 = vst [vmem:[%s207_s15] sm:$0xff] %v482_v46 }
 0x11c   : > { %488 = vst [vmem:[%s207_s15 + $0x10] sm:$0xff] %v484_v47 }
 0x11d   : > { %487 = vst [vmem:[%s207_s15 + $0x8] sm:$0xff] %v483_v48 }
 0x11e   : > { %489 = vst [vmem:[%s207_s15 + $0x18] sm:$0xff] %v485_v49 }
 0x11f   : > { %857 = shalt.err (!%p854_p11)
}
 0x120   : > { %s937_s26 = smov 128   ;;  %s938_s21 = smov 256  }
 0x121   : > { %s939_s25 = smov 8  }
 0x122   : > { %702 = dma.vmem_to_hbm [thread:$0]  (%p1025_p9), %s505_s8, 512, %s507_s22, %s491_s23, %s937_s26, %s938_s21, %s939_s25  }
 0x123 PF: > { %p713_p13 = scmp.ge.s32.totalorder %s928_s19, 2  ;;  %s521_s29 = sand.u32 1, %s900_s12  }
 0x124   : > { %s522_s30 = scalar_lea.sflag [#allocation4], %s521_s29 }
 0x125   : > { %p709_p0 = pnand %p713_p13, %p1031_p12 }
 0x127   : > { %p710_p1 = pneg %p709_p0 }
 0x129   : > { %895 = dma.done.wait (%p710_p1), %s522_s30, 512  }
 0x12a   : > { %897 = vsyncadd (%p710_p1), %s522_s30, 4294966784  ;;  %s19_s19 = sadd.s32 1, %s928_s19   ;;  %s1168_s24 = sld [smem:[#allocation10_spill]] }
 0x12b   : > { %p16_p2 = scmp.ge.s32.totalorder %s19_s19, 6   ;;  %s1169_s28 = sld [smem:[#allocation8_spill]] }
 0x12c   : > { %s1170_s7 = sld [smem:[#allocation9_spill]]  ;;  %s1171_s12 = smov %s904_s13 }
 0x12d   : > { %s1172_s13 = smov %s908_s14  ;;  %s1174_s15 = smov %s920_s17 }
 0x12e   : > { %s1175_s16 = smov %s924_s18  ;;  %18 = sbr.rel (!%p16_p2) target bundleno = 7 (0x7), region = 77 }
 0x130   : > { %s1173_s14 = smov %s1168_s24 }
 0x131   : > { %s1176_s17 = smov %s1169_s28 }
 0x132   : > { %s1177_s18 = smov %s1170_s7 }
 0x133   :  { %528 = vsyncpa [#allocation3], 1 }
 0x134   :  { %530 = vsyncpa [#allocation3 + $0x1], 1 }
 0x135   :  { %531 = vsyncpa [#allocation4], 1 }
 0x136   :  { %533 = vsyncpa [#allocation4 + $0x1], 1 }

</bundles_post_ra>
